<compile_context>
chip_gen: v7x
topology: tpu7x:2x2x1
jax: 0.10.0
libtpu: 0.0.40
codegen_flags: <defaults>
</compile_context>

<pallas_src>
import jax
import jax.numpy as jnp
from jax.experimental import pallas as pl
from jax.experimental.pallas import tpu as pltpu


def _round_up(x, m):
    return ((x + m - 1) // m) * m


def _bert_embeddings_kernel(xcat_ref, w_lin_ref, b_lin_ref, pos_ref, tok_ref,
                            w_ln_ref, b_ln_ref, o_ref):
    # Fused: linear projection + positional/token-type add + FakeLayerNorm affine.
    y = jnp.dot(xcat_ref[...], w_lin_ref[...],
                preferred_element_type=jnp.float32)
    y = y + b_lin_ref[...] + pos_ref[...] + tok_ref[...]
    o_ref[...] = (w_ln_ref[...] * y + b_ln_ref[...]).astype(o_ref.dtype)


def bert_embeddings_forward(params, input_ids, token_type_ids=None,
                            position_ids=None, *, trigram_input=True,
                            row_tile=512):
    """Forward pass of BertEmbeddings (eval mode: dropout = identity).

    params:
      word_embeddings:            (V, E)  f32
      position_embeddings:        (P, H)  f32
      token_type_embeddings:      (T, H)  f32
      embedding_transformation_w: (K, H)  f32, K = 3E if trigram_input else E
      embedding_transformation_b: (H,)    f32
      ln_weight, ln_bias:         (H,)    f32
    input_ids: (B, S) int32
    """
    word_tbl = params["word_embeddings"]
    pos_tbl = params["position_embeddings"]
    tok_tbl = params["token_type_embeddings"]
    w_lin = params["embedding_transformation_w"]
    b_lin = params["embedding_transformation_b"]
    w_ln = params["ln_weight"]
    b_ln = params["ln_bias"]

    B, S = input_ids.shape
    H = w_lin.shape[1]

    if position_ids is None:
        position_ids = jnp.broadcast_to(
            jnp.arange(S, dtype=jnp.int32)[None, :], (B, S))
    if token_type_ids is None:
        token_type_ids = jnp.zeros((B, S), dtype=jnp.int32)

    # Embedding-table row gathers (data-dependent) stay in plain JAX/XLA.
    inputs_embeds = jnp.take(word_tbl, input_ids, axis=0)     # (B, S, E)
    pos_emb = jnp.take(pos_tbl, position_ids, axis=0)         # (B, S, H)
    tok_emb = jnp.take(tok_tbl, token_type_ids, axis=0)       # (B, S, H)

    if trigram_input:
        # cat([x shifted left (zero-pad tail), x, x shifted right (zero-pad head)], -1)
        inputs1 = jnp.pad(inputs_embeds[:, 1:], ((0, 0), (0, 1), (0, 0)))
        inputs2 = jnp.pad(inputs_embeds[:, :-1], ((0, 0), (1, 0), (0, 0)))
        x_cat = jnp.concatenate([inputs1, inputs_embeds, inputs2], axis=2)
    else:
        x_cat = inputs_embeds
    K = x_cat.shape[-1]
    assert K == w_lin.shape[0], "embedding_transformation weight K mismatch"
    # Lane-dense requirement: unmasked vector stores / clean MXU tiles.
    assert H % 128 == 0, "hidden_size must be a multiple of 128"
    assert K % 128 == 0, "embedding_size (x3 if trigram) must be a multiple of 128"

    rows = B * S
    x2d = x_cat.reshape(rows, K).astype(jnp.float32)
    pos2d = pos_emb.reshape(rows, H).astype(jnp.float32)
    tok2d = tok_emb.reshape(rows, H).astype(jnp.float32)

    # Row tile: as large as possible to amortize per-grid-step overhead
    # (~0.35us/step), sublane-aligned (multiple of 8), capped at the padded
    # row count.  512 rows keeps double-buffered VMEM well under the 32 MiB
    # scoped default even on v7x (64 MiB physical).
    tile = max(8, min(_round_up(row_tile, 8), _round_up(rows, 8)))
    rows_padded = _round_up(rows, tile)
    if rows_padded != rows:
        pad = rows_padded - rows
        x2d = jnp.pad(x2d, ((0, pad), (0, 0)))
        pos2d = jnp.pad(pos2d, ((0, pad), (0, 0)))
        tok2d = jnp.pad(tok2d, ((0, pad), (0, 0)))

    grid = (rows_padded // tile,)

    out2d = pl.pallas_call(
        _bert_embeddings_kernel,
        out_shape=jax.ShapeDtypeStruct((rows_padded, H), jnp.float32),
        grid=grid,
        in_specs=[
            pl.BlockSpec((tile, K), lambda i: (i, 0)),   # x_cat row tile
            pl.BlockSpec((K, H), lambda i: (0, 0)),      # linear weight (resident)
            pl.BlockSpec((1, H), lambda i: (0, 0)),      # linear bias
            pl.BlockSpec((tile, H), lambda i: (i, 0)),   # position embeddings
            pl.BlockSpec((tile, H), lambda i: (i, 0)),   # token-type embeddings
            pl.BlockSpec((1, H), lambda i: (0, 0)),      # FakeLayerNorm weight
            pl.BlockSpec((1, H), lambda i: (0, 0)),      # FakeLayerNorm bias
        ],
        out_specs=pl.BlockSpec((tile, H), lambda i: (i, 0)),
        compiler_params=pltpu.CompilerParams(
            dimension_semantics=("parallel",),
        ),
    )(
        x2d,
        w_lin.astype(jnp.float32),
        b_lin.reshape(1, H).astype(jnp.float32),
        pos2d,
        tok2d,
        w_ln.reshape(1, H).astype(jnp.float32),
        b_ln.reshape(1, H).astype(jnp.float32),
    )

    # TODO(synk): training-mode dropout (hidden_dropout_prob) not implemented;
    # eval-mode dropout is the identity.
    return out2d[:rows].reshape(B, S, H)


def _reference_forward(params, input_ids, token_type_ids=None,
                       position_ids=None, *, trigram_input=True):
    """Pure-JAX reference of the PyTorch forward (eval mode)."""
    B, S = input_ids.shape
    if position_ids is None:
        position_ids = jnp.broadcast_to(
            jnp.arange(S, dtype=jnp.int32)[None, :], (B, S))
    if token_type_ids is None:
        token_type_ids = jnp.zeros((B, S), dtype=jnp.int32)
    x = jnp.take(params["word_embeddings"], input_ids, axis=0)
    pos = jnp.take(params["position_embeddings"], position_ids, axis=0)
    tok = jnp.take(params["token_type_embeddings"], token_type_ids, axis=0)
    if trigram_input:
        x1 = jnp.pad(x[:, 1:], ((0, 0), (0, 1), (0, 0)))
        x2 = jnp.pad(x[:, :-1], ((0, 0), (1, 0), (0, 0)))
        x = jnp.concatenate([x1, x, x2], axis=2)
    y = jnp.dot(x, params["embedding_transformation_w"],
                preferred_element_type=jnp.float32)
    y = y + params["embedding_transformation_b"]
    y = y + pos + tok
    y = params["ln_weight"] * y + params["ln_bias"]
    return y


if __name__ == "__main__":
    # Small BERT-like config; H and 3E kept lane-dense (multiples of 128).
    B, S = 2, 8
    V, E, H = 100, 128, 128
    P, T = 32, 2

    key = jax.random.PRNGKey(0)
    ks = jax.random.split(key, 8)

    params = {
        "word_embeddings": jax.random.normal(ks[0], (V, E), jnp.float32),
        "position_embeddings": jax.random.normal(ks[1], (P, H), jnp.float32),
        "token_type_embeddings": jax.random.normal(ks[2], (T, H), jnp.float32),
        "embedding_transformation_w":
            0.05 * jax.random.normal(ks[3], (3 * E, H), jnp.float32),
        "embedding_transformation_b":
            0.5 * jax.random.normal(ks[4], (H,), jnp.float32),
        # Module __init__ uses ones/zeros; use non-trivial values here so the
        # affine path is actually exercised by the check.
        "ln_weight": 1.0 + 0.1 * jax.random.normal(ks[5], (H,), jnp.float32),
        "ln_bias": 0.2 * jax.random.normal(ks[6], (H,), jnp.float32),
    }
    input_ids = jax.random.randint(ks[7], (B, S), 0, V, dtype=jnp.int32)

    out = bert_embeddings_forward(params, input_ids, trigram_input=True)
    out = jax.block_until_ready(out)

    ref = _reference_forward(params, input_ids, trigram_input=True)
    assert out.shape == (B, S, H)
    max_err = jnp.max(jnp.abs(out - ref))
    assert jnp.allclose(out, ref, atol=1e-2, rtol=1e-2), \
        f"mismatch vs reference, max abs err = {max_err}"

    print("KERNEL_OK")
</pallas_src>

<mosaic_0001>
module attributes {stable_mosaic.version = 11 : i64} {
  func.func @_bert_embeddings_kernel(%arg0: i32, %arg1: memref<16x384xf32, #tpu.memory_space<vmem>>, %arg2: memref<384x128xf32, #tpu.memory_space<vmem>>, %arg3: memref<1x128xf32, #tpu.memory_space<vmem>>, %arg4: memref<16x128xf32, #tpu.memory_space<vmem>>, %arg5: memref<16x128xf32, #tpu.memory_space<vmem>>, %arg6: memref<1x128xf32, #tpu.memory_space<vmem>>, %arg7: memref<1x128xf32, #tpu.memory_space<vmem>>, %arg8: memref<16x128xf32, #tpu.memory_space<vmem>>) attributes {dimension_semantics = [#tpu.dimension_semantics<parallel>], iteration_bounds = array<i64: 1>, scalar_prefetch = 0 : i64, scratch_operands = 0 : i64, tpu.core_type = #tpu.core_type<tc>, window_params = [{transform_indices = @transform_0, window_bounds = array<i64: 16, 384>}, {pipeline_mode = #tpu.pipeline_mode<synchronous>, transform_indices = @transform_1, window_bounds = array<i64: 384, 128>}, {pipeline_mode = #tpu.pipeline_mode<synchronous>, transform_indices = @transform_2, window_bounds = array<i64: 1, 128>}, {transform_indices = @transform_3, window_bounds = array<i64: 16, 128>}, {transform_indices = @transform_4, window_bounds = array<i64: 16, 128>}, {pipeline_mode = #tpu.pipeline_mode<synchronous>, transform_indices = @transform_5, window_bounds = array<i64: 1, 128>}, {pipeline_mode = #tpu.pipeline_mode<synchronous>, transform_indices = @transform_6, window_bounds = array<i64: 1, 128>}, {transform_indices = @transform_7, window_bounds = array<i64: 16, 128>}]} {
    %c0 = arith.constant 0 : index
    %c0_0 = arith.constant 0 : index
    %0 = vector.load %arg1[%c0, %c0_0] : memref<16x384xf32, #tpu.memory_space<vmem>>, vector<16x384xf32>
    %c0_1 = arith.constant 0 : index
    %c0_2 = arith.constant 0 : index
    %1 = vector.load %arg2[%c0_1, %c0_2] : memref<384x128xf32, #tpu.memory_space<vmem>>, vector<384x128xf32>
    %cst = arith.constant dense<0.000000e+00> : vector<16x128xf32>
    %2 = tpu.matmul %0, %1, %cst {dimension_numbers = #tpu.dot_dimension_numbers<[1], [0], [0], [1], [0, 0, 1, 1], [], []>} : vector<16x384xf32>, vector<384x128xf32>, vector<16x128xf32> -> vector<16x128xf32>
    %c0_3 = arith.constant 0 : index
    %c0_4 = arith.constant 0 : index
    %3 = vector.load %arg3[%c0_3, %c0_4] : memref<1x128xf32, #tpu.memory_space<vmem>>, vector<1x128xf32>
    %4 = vector.broadcast %3 : vector<1x128xf32> to vector<16x128xf32>
    %5 = arith.addf %2, %4 : vector<16x128xf32>
    %c0_5 = arith.constant 0 : index
    %c0_6 = arith.constant 0 : index
    %6 = vector.load %arg4[%c0_5, %c0_6] : memref<16x128xf32, #tpu.memory_space<vmem>>, vector<16x128xf32>
    %7 = arith.addf %5, %6 : vector<16x128xf32>
    %c0_7 = arith.constant 0 : index
    %c0_8 = arith.constant 0 : index
    %8 = vector.load %arg5[%c0_7, %c0_8] : memref<16x128xf32, #tpu.memory_space<vmem>>, vector<16x128xf32>
    %9 = arith.addf %7, %8 : vector<16x128xf32>
    %c0_9 = arith.constant 0 : index
    %c0_10 = arith.constant 0 : index
    %10 = vector.load %arg6[%c0_9, %c0_10] : memref<1x128xf32, #tpu.memory_space<vmem>>, vector<1x128xf32>
    %11 = vector.broadcast %10 : vector<1x128xf32> to vector<16x128xf32>
    %12 = arith.mulf %11, %9 : vector<16x128xf32>
    %c0_11 = arith.constant 0 : index
    %c0_12 = arith.constant 0 : index
    %13 = vector.load %arg7[%c0_11, %c0_12] : memref<1x128xf32, #tpu.memory_space<vmem>>, vector<1x128xf32>
    %14 = vector.broadcast %13 : vector<1x128xf32> to vector<16x128xf32>
    %15 = arith.addf %12, %14 : vector<16x128xf32>
    %c0_13 = arith.constant 0 : index
    %c0_14 = arith.constant 0 : index
    %16 = vector.load %arg8[%c0_13, %c0_14] : memref<16x128xf32, #tpu.memory_space<vmem>>, vector<16x128xf32>
    tpu.vector_store %arg8[%c0_13, %c0_14], %15 {strides = array<i32>} : memref<16x128xf32, #tpu.memory_space<vmem>>, vector<16x128xf32>,
    return
  }
  func.func @transform_0(%arg0: i32) -> (i32, i32) {
    %c0_i32 = arith.constant 0 : i32
    %c0_i32_0 = arith.constant 0 : i32
    return %arg0, %c0_i32 : i32, i32
  }
  func.func @transform_1(%arg0: i32) -> (i32, i32) {
    %c0_i32 = arith.constant 0 : i32
    %c0_i32_0 = arith.constant 0 : i32
    %c0_i32_1 = arith.constant 0 : i32
    return %c0_i32, %c0_i32_0 : i32, i32
  }
  func.func @transform_2(%arg0: i32) -> (i32, i32) {
    %c0_i32 = arith.constant 0 : i32
    %c0_i32_0 = arith.constant 0 : i32
    %c0_i32_1 = arith.constant 0 : i32
    return %c0_i32, %c0_i32_0 : i32, i32
  }
  func.func @transform_3(%arg0: i32) -> (i32, i32) {
    %c0_i32 = arith.constant 0 : i32
    %c0_i32_0 = arith.constant 0 : i32
    return %arg0, %c0_i32 : i32, i32
  }
  func.func @transform_4(%arg0: i32) -> (i32, i32) {
    %c0_i32 = arith.constant 0 : i32
    %c0_i32_0 = arith.constant 0 : i32
    return %arg0, %c0_i32 : i32, i32
  }
  func.func @transform_5(%arg0: i32) -> (i32, i32) {
    %c0_i32 = arith.constant 0 : i32
    %c0_i32_0 = arith.constant 0 : i32
    %c0_i32_1 = arith.constant 0 : i32
    return %c0_i32, %c0_i32_0 : i32, i32
  }
  func.func @transform_6(%arg0: i32) -> (i32, i32) {
    %c0_i32 = arith.constant 0 : i32
    %c0_i32_0 = arith.constant 0 : i32
    %c0_i32_1 = arith.constant 0 : i32
    return %c0_i32, %c0_i32_0 : i32, i32
  }
  func.func @transform_7(%arg0: i32) -> (i32, i32) {
    %c0_i32 = arith.constant 0 : i32
    %c0_i32_0 = arith.constant 0 : i32
    return %arg0, %c0_i32 : i32, i32
  }
}

</mosaic_0001>

<bundles_post_ra>
// kernel: tpu_custom_call.1
= control target key start
LH: loop header
LB: loop body
LE: loop exit
PB: predicated region body
PF: predicated region fallthrough
CT: control target
= control target key end

     0   :  { %12 = vsyncpa [#allocation3], 0  ;;  %s762_s0 = inlined_call_operand.hbm [shape: f32[16,384], index: 0, kind: input, shape index: {}]   ;;  %s763_s1 = inlined_call_operand.hbm [shape: f32[384,128], index: 1, kind: input, shape index: {}]   ;;  %s764_s2 = inlined_call_operand.vmem [shape: f32[1,128], index: 2, kind: input, shape index: {}]   ;;  %s765_s3 = inlined_call_operand.hbm [shape: f32[16,128], index: 3, kind: input, shape index: {}]   ;;  %s766_s4 = inlined_call_operand.hbm [shape: f32[16,128], index: 4, kind: input, shape index: {}]   ;;  %s767_s5 = inlined_call_operand.vmem [shape: f32[1,128], index: 5, kind: input, shape index: {}]   ;;  %s768_s6 = inlined_call_operand.vmem [shape: f32[1,128], index: 6, kind: input, shape index: {}]   ;;  %s769_s7 = inlined_call_operand.hbm [shape: f32[16,128], index: 7, kind: output, shape index: {}]  }
   0x1   :  { %13 = vsyncpa [#allocation6], 0 }
   0x2   :  { %14 = vsyncpa [#allocation9], 0 }
   0x3   :  { %15 = vsyncpa [#allocation4], 0  ;;  %s625_s24 = smov [#allocation5]   ;;  %s507_s28 = scalar_lea.hbm %s763_s1, 6144 }
   0x4   :  { %s33_s25 = sshll.u32 %s625_s24, 4  ;;  %p508_p0 = scmp.ne.s32.totalorder %s763_s1, %s507_s28  ;;  %s34_s25 = int_to_ptr.vmem [resolvable:$true] %s33_s25 }
   0x5   :  { %p511_p1 = scmp.lt.u32.totalorder %s507_s28, %s763_s1 }
   0x7   :  { %p513_p2 = pnand %p511_p1, %p508_p0 }
   0x9   :  { %516 = shalt.err (!%p513_p2)
}
   0xa   :  { %s517_s10 = scalar_lea.vmem %s34_s25, 6144  ;;  %p522_p4 = scmp.lt.s32.totalorder %s34_s25, %s34_s25 }
   0xb   :  { %p518_p3 = scmp.ne.s32.totalorder %s34_s25, %s517_s10  ;;  %p523_p5 = scmp.lt.s32.totalorder %s517_s10, %s517_s10 }
   0xd   :  { %p524_p6 = por %p523_p5, %p522_p4 }
   0xf   :  { %p525_p7 = pnand %p524_p6, %p518_p3 }
  0x11   :  { %528 = shalt.err (!%p525_p7)
}
  0x12   :  { %s626_s11 = smov 128   ;;  %s627_s12 = smov 8  }
  0x13   :  { %39 = dma.hbm_to_vmem [thread:$0]  %s763_s1, 6144, %s34_s25, [#allocation6], %s626_s11, %s626_s11, %s627_s12  }
  0x14   :  { %s628_s15 = smov [#allocation2]   ;;  %s529_s19 = scalar_lea.hbm %s762_s0, 768 }
  0x15   :  { %s21_s16 = sshll.u32 %s628_s15, 4  ;;  %p530_p8 = scmp.ne.s32.totalorder %s762_s0, %s529_s19  ;;  %s22_s16 = int_to_ptr.vmem [resolvable:$true] %s21_s16 }
  0x16   :  { %p533_p9 = scmp.lt.u32.totalorder %s529_s19, %s762_s0 }
  0x18   :  { %p535_p10 = pnand %p533_p9, %p530_p8 }
  0x1a   :  { %538 = shalt.err (!%p535_p10)
}
  0x1b   :  { %s539_s24 = scalar_lea.vmem %s22_s16, 768  ;;  %p544_p12 = scmp.lt.s32.totalorder %s22_s16, %s22_s16 }
  0x1c   :  { %p540_p11 = scmp.ne.s32.totalorder %s22_s16, %s539_s24  ;;  %p545_p13 = scmp.lt.s32.totalorder %s539_s24, %s539_s24 }
  0x1e   :  { %p546_p0 = por %p545_p13, %p544_p12 }
  0x20   :  { %p547_p1 = pnand %p546_p0, %p540_p11 }
  0x22   :  { %550 = shalt.err (!%p547_p1)
}
  0x23   :  { %s629_s1 = smov 384   ;;  %s630_s25 = smov 24  }
  0x24   :  { %27 = dma.hbm_to_vmem [thread:$0]  %s762_s0, 768, %s22_s16, [#allocation3], %s629_s1, %s629_s1, %s630_s25  }
  0x25   :  { %s631_s28 = smov [#allocation7]   ;;  %s632_s30 = smov [#allocation8]  }
  0x26   :  { %s47_s29 = sshll.u32 %s631_s28, 4  ;;  %s59_s8 = sshll.u32 %s632_s30, 4  ;;  %s48_s29 = int_to_ptr.vmem [resolvable:$true] %s47_s29  ;;  %s701_s8 = int_to_ptr.vmem [resolvable:$true] %s59_s8 }
  0x27   :  { %s551_s13 = scalar_lea.hbm %s765_s3, 256 }
  0x28   :  { %p552_p2 = scmp.ne.s32.totalorder %s765_s3, %s551_s13  ;;  %p555_p3 = scmp.lt.u32.totalorder %s551_s13, %s765_s3 }
  0x2a   :  { %p557_p4 = pnand %p555_p3, %p552_p2 }
  0x2c   :  { %560 = shalt.err (!%p557_p4)
}
  0x2d   :  { %s561_s0 = scalar_lea.vmem %s48_s29, 256  ;;  %p566_p6 = scmp.lt.s32.totalorder %s48_s29, %s48_s29 }
  0x2e   :  { %p562_p5 = scmp.ne.s32.totalorder %s48_s29, %s561_s0  ;;  %p567_p7 = scmp.lt.s32.totalorder %s561_s0, %s561_s0 }
  0x30   :  { %p568_p8 = por %p567_p7, %p566_p6 }
  0x32   :  { %p569_p9 = pnand %p568_p8, %p562_p5 }
  0x34   :  { %572 = shalt.err (!%p569_p9)
}
  0x35   :  { %53 = dma.hbm_to_vmem [thread:$0]  %s765_s3, 256, %s48_s29, [#allocation6], %s626_s11, %s626_s11, %s627_s12  }
  0x36   :  { %s573_s22 = scalar_lea.hbm %s766_s4, 256 }
  0x37   :  { %p574_p10 = scmp.ne.s32.totalorder %s766_s4, %s573_s22  ;;  %p577_p11 = scmp.lt.u32.totalorder %s573_s22, %s766_s4 }
  0x39   :  { %p579_p12 = pnand %p577_p11, %p574_p10 }
  0x3b   :  { %582 = shalt.err (!%p579_p12)
}
  0x3c   :  { %s583_s26 = scalar_lea.vmem %s701_s8, 256  ;;  %p588_p0 = scmp.lt.s32.totalorder %s701_s8, %s701_s8 }
  0x3d   :  { %p584_p13 = scmp.ne.s32.totalorder %s701_s8, %s583_s26  ;;  %p589_p1 = scmp.lt.s32.totalorder %s583_s26, %s583_s26 }
  0x3f   :  { %p590_p2 = por %p589_p1, %p588_p0 }
  0x41   :  { %p591_p3 = pnand %p590_p2, %p584_p13 }
  0x43   :  { %594 = shalt.err (!%p591_p3)
}
  0x44   :  { %65 = dma.hbm_to_vmem [thread:$0]  %s766_s4, 256, %s701_s8, [#allocation9], %s626_s11, %s626_s11, %s627_s12  }
  0x45   :  { %617 = dma.done.wait [#allocation3], 768  }
  0x46   :  { %618 = vsyncadd [#allocation3], 4294966528 }
  0x47   :  { %619 = dma.done.wait [#allocation6], 6400  }
  0x48   :  { %620 = vsyncadd [#allocation6], 4294960896 }
  0x49   :  { %621 = dma.done.wait [#allocation9], 256  }
  0x4a   :  { %622 = vsyncadd [#allocation9], 4294967040  ;;  %v104_v0 = vld [vmem:[#allocation5 + $0x80] sm:$0xff]  ;;  %v105_v1 = vld [vmem:[#allocation5 + $0x88] sm:$0xff]  ;;  %s633_s9 = smov [#allocation10]  }
  0x4b   :  { %v88_v2 = vld [vmem:[#allocation5] sm:$0xff]  ;;  %v434_v3 = vpack.c.bf16 %v105_v1, %v104_v0  ;;  %v89_v4 = vld [vmem:[#allocation5 + $0x8] sm:$0xff]  ;;  %v106_v5 = vld [vmem:[#allocation5 + $0x90] sm:$0xff]  ;;  %s326_s10 = sshll.u32 %s633_s9, 4  ;;  %s327_s10 = int_to_ptr.vmem [resolvable:$true] %s326_s10 }
  0x4c   :  { %v107_v6 = vld [vmem:[#allocation5 + $0x98] sm:$0xff]  ;;  %v436_v7 = vpack.c.bf16 %v89_v4, %v88_v2  ;;  %v120_v9 = vld [vmem:[#allocation5 + $0x100] sm:$0xff]  ;;  %v121_v10 = vld [vmem:[#allocation5 + $0x108] sm:$0xff]  ;;  %s595_s13 = scalar_lea.vmem %s327_s10, 256  ;;  %p600_p5 = scmp.lt.s32.totalorder %s327_s10, %s327_s10 }
  0x4d   :  { %v438_v8 = vpack.c.bf16 %v107_v6, %v106_v5  ;;  %v90_v11 = vld [vmem:[#allocation5 + $0x10] sm:$0xff]  ;;  %435 = vmatprep.subr.bf16.mxu0 %v434_v3  ;;  %v466_v12 = vpack.c.bf16 %v121_v10, %v120_v9  ;;  %v91_v13 = vld [vmem:[#allocation5 + $0x18] sm:$0xff]  ;;  %v108_v14 = vld [vmem:[#allocation5 + $0xa0] sm:$0xff]  ;;  %p596_p4 = scmp.ne.s32.totalorder %s327_s10, %s595_s13  ;;  %p601_p6 = scmp.lt.s32.totalorder %s595_s13, %s595_s13 }
  0x4e   :  { %v109_v15 = vld [vmem:[#allocation5 + $0xa8] sm:$0xff]  ;;  %437 = vmatpush3.bf16.msra.mxu0 %v436_v7  ;;  %v440_v16 = vpack.c.bf16 %v91_v13, %v90_v11  ;;  %v122_v17 = vld [vmem:[#allocation5 + $0x110] sm:$0xff]  ;;  %v123_v18 = vld [vmem:[#allocation5 + $0x118] sm:$0xff] }
  0x4f   :  { %439 = vmatprep.subr.bf16.mxu0 %v438_v8  ;;  %467 = vmatprep.subr.bf16.mxu1 %v466_v12  ;;  %v442_v19 = vpack.c.bf16 %v109_v15, %v108_v14  ;;  %v470_v20 = vpack.c.bf16 %v123_v18, %v122_v17  ;;  %v92_v21 = vld [vmem:[#allocation5 + $0x20] sm:$0xff]  ;;  %v93_v22 = vld [vmem:[#allocation5 + $0x28] sm:$0xff]  ;;  %v110_v23 = vld [vmem:[#allocation5 + $0xb0] sm:$0xff]  ;;  %p602_p7 = por %p601_p6, %p600_p5 }
  0x50   :  { %469 = vmatpush3.bf16.msra.mxu1 %v466_v12  ;;  %v111_v24 = vld [vmem:[#allocation5 + $0xb8] sm:$0xff]  ;;  %v124_v25 = vld [vmem:[#allocation5 + $0x120] sm:$0xff]  ;;  %v125_v26 = vld [vmem:[#allocation5 + $0x128] sm:$0xff]  ;;  %v444_v28 = vpack.c.bf16 %v93_v22, %v92_v21 }
  0x51   :  { %471 = vmatprep.subr.bf16.mxu1 %v470_v20  ;;  %v474_v27 = vpack.c.bf16 %v125_v26, %v124_v25  ;;  %v126_v29 = vld [vmem:[#allocation5 + $0x130] sm:$0xff]  ;;  %v127_v30 = vld [vmem:[#allocation5 + $0x138] sm:$0xff]  ;;  %v446_v31 = vpack.c.bf16 %v111_v24, %v110_v23  ;;  %v112_v34 = vld [vmem:[#allocation5 + $0xc0] sm:$0xff]  ;;  %p603_p8 = pnand %p602_p7, %p596_p4 }
  0x52   :  { %441 = vmatpush3.bf16.msra.mxu0 %v440_v16  ;;  %v94_v32 = vld [vmem:[#allocation5 + $0x30] sm:$0xff]  ;;  %v95_v33 = vld [vmem:[#allocation5 + $0x38] sm:$0xff]  ;;  %v113_v35 = vld [vmem:[#allocation5 + $0xc8] sm:$0xff]  ;;  %v478_v36 = vpack.c.bf16 %v127_v30, %v126_v29 }
  0x53   :  { %443 = vmatprep.subr.bf16.mxu0 %v442_v19  ;;  %v448_v37 = vpack.c.bf16 %v95_v33, %v94_v32  ;;  %v128_v38 = vld [vmem:[#allocation5 + $0x140] sm:$0xff]  ;;  %v129_v39 = vld [vmem:[#allocation5 + $0x148] sm:$0xff]  ;;  %v450_v40 = vpack.c.bf16 %v113_v35, %v112_v34  ;;  %v114_v43 = vld [vmem:[#allocation5 + $0xd0] sm:$0xff] }
  0x54   :  { %473 = vmatpush3.bf16.msra.mxu1 %v470_v20  ;;  %v96_v41 = vld [vmem:[#allocation5 + $0x40] sm:$0xff]  ;;  %v97_v42 = vld [vmem:[#allocation5 + $0x48] sm:$0xff]  ;;  %v115_v44 = vld [vmem:[#allocation5 + $0xd8] sm:$0xff]  ;;  %v482_v45 = vpack.c.bf16 %v129_v39, %v128_v38 }
  0x55   :  { %475 = vmatprep.subr.bf16.mxu1 %v474_v27  ;;  %v83_v46 = vld [vmem:[#allocation2 + $0x8] sm:$0xff]  ;;  %v452_v47 = vpack.c.bf16 %v97_v42, %v96_v41  ;;  %v130_v48 = vld [vmem:[#allocation5 + $0x150] sm:$0xff]  ;;  %v454_v50 = vpack.c.bf16 %v115_v44, %v114_v43  ;;  %v84_v53 = vld [vmem:[#allocation2 + $0x10] sm:$0xff] }
  0x56   :  { %445 = vmatpush3.bf16.msra.mxu0 %v444_v28  ;;  %v131_v49 = vld [vmem:[#allocation5 + $0x158] sm:$0xff]  ;;  %207 = vmatprep.mubr.f32.mxu0 %v83_v46  ;;  %v98_v51 = vld [vmem:[#allocation5 + $0x50] sm:$0xff]  ;;  %v116_v54 = vld [vmem:[#allocation5 + $0xe0] sm:$0xff] }
  0x57   :  { %447 = vmatprep.subr.bf16.mxu0 %v446_v31  ;;  %v99_v52 = vld [vmem:[#allocation5 + $0x58] sm:$0xff]  ;;  %v117_v55 = vld [vmem:[#allocation5 + $0xe8] sm:$0xff]  ;;  %431 = vmatprep.mubr.f32.mxu1 %v84_v53  ;;  %v486_v56 = vpack.c.bf16 %v131_v49, %v130_v48  ;;  %v132_v58 = vld [vmem:[#allocation5 + $0x160] sm:$0xff] }
  0x58   :  { %477 = vmatpush3.bf16.msra.mxu1 %v474_v27  ;;  %v456_v57 = vpack.c.bf16 %v99_v52, %v98_v51  ;;  %v133_v59 = vld [vmem:[#allocation5 + $0x168] sm:$0xff]  ;;  %v458_v60 = vpack.c.bf16 %v117_v55, %v116_v54  ;;  %v100_v61 = vld [vmem:[#allocation5 + $0x60] sm:$0xff]  ;;  %v118_v63 = vld [vmem:[#allocation5 + $0xf0] sm:$0xff] }
  0x59   :  { %479 = vmatprep.subr.bf16.mxu1 %v478_v36  ;;  %v101_v62 = vld [vmem:[#allocation5 + $0x68] sm:$0xff]  ;;  %v119_v0 = vld [vmem:[#allocation5 + $0xf8] sm:$0xff]  ;;  %v490_v1 = vpack.c.bf16 %v133_v59, %v132_v58  ;;  %v134_v3 = vld [vmem:[#allocation5 + $0x170] sm:$0xff] }
  0x5a   :  { %449 = vmatpush3.bf16.msra.mxu0 %v448_v37  ;;  %v460_v2 = vpack.c.bf16 %v101_v62, %v100_v61  ;;  %v135_v4 = vld [vmem:[#allocation5 + $0x178] sm:$0xff]  ;;  %v462_v5 = vpack.c.bf16 %v119_v0, %v118_v63  ;;  %v102_v6 = vld [vmem:[#allocation5 + $0x70] sm:$0xff]  ;;  %v85_v13 = vld [vmem:[#allocation2 + $0x18] sm:$0xff] }
  0x5b   :  { %451 = vmatprep.subr.bf16.mxu0 %v450_v40  ;;  %v103_v7 = vld [vmem:[#allocation5 + $0x78] sm:$0xff]  ;;  %v494_v8 = vpack.c.bf16 %v135_v4, %v134_v3  ;;  %v82_v10 = vld [vmem:[#allocation2] sm:$0xff]  ;;  %v293_v23 = vld [vmem:[#allocation7] sm:$0xff] }
  0x5c   :  { %481 = vmatpush3.bf16.msra.mxu1 %v478_v36  ;;  %v464_v9 = vpack.c.bf16 %v103_v7, %v102_v6  ;;  %v86_v11 = vld [vmem:[#allocation2 + $0x20] sm:$0xff]  ;;  %v87_v12 = vld [vmem:[#allocation2 + $0x28] sm:$0xff]  ;;  %v294_v29 = vld [vmem:[#allocation7 + $0x8] sm:$0xff] }
  0x5d   :  { %483 = vmatprep.subr.bf16.mxu1 %v482_v45  ;;  %v340_v16 = vld [vmem:[%s764_s2] ss:$0 sm:$0xff]  ;;  %v298_v33 = vld [vmem:[#allocation8 + $0x8] sm:$0xff] }
  0x5e   :  { %453 = vmatpush3.bf16.msra.mxu0 %v452_v47  ;;  %v297_v26 = vld [vmem:[#allocation8] sm:$0xff] }
  0x5f   :  { %455 = vmatprep.subr.bf16.mxu0 %v454_v50  ;;  %v341_v30 = vld [vmem:[%s767_s5] ss:$0 sm:$0xff] }
  0x60   :  { %485 = vmatpush3.bf16.msra.mxu1 %v482_v45  ;;  %v342_v34 = vld [vmem:[%s768_s6] ss:$0 sm:$0xff] }
  0x61   :  { %487 = vmatprep.subr.bf16.mxu1 %v486_v56 }
  0x62   :  { %457 = vmatpush3.bf16.msra.mxu0 %v456_v57 }
  0x63   :  { %459 = vmatprep.subr.bf16.mxu0 %v458_v60 }
  0x64   :  { %489 = vmatpush3.bf16.msra.mxu1 %v486_v56 }
  0x65   :  { %491 = vmatprep.subr.bf16.mxu1 %v490_v1 }
  0x66   :  { %461 = vmatpush3.bf16.msra.mxu0 %v460_v2 }
  0x67   :  { %463 = vmatprep.subr.bf16.mxu0 %v462_v5 }
  0x68   :  { %493 = vmatpush3.bf16.msra.mxu1 %v490_v1 }
  0x69   :  { %495 = vmatprep.subr.bf16.mxu1 %v494_v8 }
  0x6a   :  { %465 = vmatpush3.bf16.msra.mxu0 %v464_v9 }
  0x6c   :  { %497 = vmatpush3.bf16.msra.mxu1 %v494_v8 }
  0x6d   :  { %208 = vmatmul.mubr.f32.vlgmr.msra.gmra.mrb[0].mxu0 %v82_v10 }
  0x6e   :  { %212 = vmatprep.mubr.f32.mxu0 %v86_v11 }
  0x6f   :  { %432 = vmatmul.mubr.f32.vlgmr.msra.gmra.mrb[0].mxu1 %v87_v12 }
  0x71   :  { %213 = vmatmul.mubr.f32.gmra.mrb[2].mxu0 %v85_v13 }
 0x140   :  { %v375_v14 = vpop.f32.mrb[0].mxu0 }
 0x141   :  { %v376_v15 = vpop.f32.mrb[1].mxu0 }
 0x142   :  { %v377_v17 = vadd.f32 %v376_v15, %v375_v14  ;;  %v433_v18 = vpop.f32.mrb[0].mxu1 }
 0x143   :  { %v284_v19 = vpop.f32.mrb[1].mxu1 }
 0x144   :  { %v378_v20 = vpop.f32.mrb[2].mxu0  ;;  %v210_v21 = vadd.f32 %v377_v17, %v340_v16 }
 0x145   :  { %v379_v22 = vpop.f32.mrb[3].mxu0 }
 0x146   :  { %v380_v24 = vadd.f32 %v379_v22, %v378_v20  ;;  %v285_v25 = vadd.f32 %v284_v19, %v210_v21 }
 0x148   :  { %v215_v27 = vadd.f32 %v380_v24, %v340_v16  ;;  %v295_v28 = vadd.f32 %v293_v23, %v285_v25 }
 0x14a   :  { %v290_v31 = vadd.f32 %v433_v18, %v215_v27  ;;  %v299_v32 = vadd.f32 %v297_v26, %v295_v28 }
 0x14c   :  { %v296_v35 = vadd.f32 %v294_v29, %v290_v31  ;;  %v308_v36 = vmul.f32 %v341_v30, %v299_v32 }
 0x14e   :  { %v300_v37 = vadd.f32 %v298_v33, %v296_v35  ;;  %v317_v38 = vadd.f32 %v342_v34, %v308_v36 }
 0x150   :  { %v309_v39 = vmul.f32 %v341_v30, %v300_v37  ;;  %319 = vst [vmem:[#allocation10] sm:$0xff] %v317_v38 }
 0x152   :  { %v318_v40 = vadd.f32 %v342_v34, %v309_v39 }
 0x154   :  { %320 = vst [vmem:[#allocation10 + $0x8] sm:$0xff] %v318_v40 }
 0x155   :  { %606 = shalt.err (!%p603_p8)
}
 0x156   :  { %s607_s14 = scalar_lea.hbm %s769_s7, 256 }
 0x157   :  { %p608_p9 = scmp.ne.s32.totalorder %s769_s7, %s607_s14  ;;  %p611_p10 = scmp.lt.u32.totalorder %s607_s14, %s769_s7 }
 0x159   :  { %p613_p11 = pnand %p611_p10, %p608_p9 }
 0x15b   :  { %616 = shalt.err (!%p613_p11)
}
 0x15c   :  { %332 = dma.vmem_to_hbm [thread:$0]  %s327_s10, 256, %s769_s7, [#allocation4], %s626_s11, %s626_s11, %s627_s12  }
 0x15d   :  { %623 = dma.done.wait [#allocation4], 256  }
 0x15e   :  { %624 = vsyncadd [#allocation4], 4294967040 }
 0x15f   :  { %336 = vsyncpa [#allocation3], 1 }
 0x160   :  { %337 = vsyncpa [#allocation6], 1 }
 0x161   :  { %338 = vsyncpa [#allocation9], 1 }
 0x162   :  { %339 = vsyncpa [#allocation4], 1 }

</bundles_post_ra>
